<compile_context>
chip_gen: v6e
topology: v6e:2x2x1
jax: 0.10.0
libtpu: 0.0.40
codegen_flags: <defaults>
</compile_context>

<pallas_src>
import math

import jax
import jax.numpy as jnp
from jax.experimental import pallas as pl
from jax.experimental.pallas import tpu as pltpu


# ----------------------------------------------------------------------------
# Kernel A: flattened fused MLP   y = relu(x @ W1 + b1) @ W2 + b2
#           x rows = flattened (B*L);  bf16 MXU operands, f32 accumulate.
# ----------------------------------------------------------------------------
def _flat_mlp_kernel(x_ref, w1_ref, b1_ref, w2_ref, b2_ref, o_ref):
    # x_ref:  (tm, Din)  f32 tile of flattened rows
    # w1_ref: (Din, H)   bf16, constant block index -> VMEM-resident
    # b1_ref: (1, H)     f32
    # w2_ref: (H, Dout)  bf16
    # b2_ref: (1, Dout)  f32
    # o_ref:  (tm, Dout) f32
    x = x_ref[...]
    h = jnp.dot(x.astype(jnp.bfloat16), w1_ref[...],
                preferred_element_type=jnp.float32)            # MXU bf16, f32 acc
    h = jnp.maximum(h + b1_ref[...], 0.0)                      # f32 bias + ReLU (eval dropout = id)
    y = jnp.dot(h.astype(jnp.bfloat16), w2_ref[...],
                preferred_element_type=jnp.float32)
    o_ref[...] = (y + b2_ref[...]).astype(o_ref.dtype)


def _pick_m_tile(M, target=256):
    """Pick an M tile: <=target rows, multiple of 8, >=2 grid steps when M>8,
    and (if possible) a divisor of M so no zero-padded rows are needed."""
    tm = min(target, M)
    if M > 8:
        tm = min(tm, -(-M // 2))          # guarantee >= 2 grid steps (v7x megacore)
    tm = max(8, (tm // 8) * 8)            # sublane multiple
    for cand in range(tm, 7, -8):
        if M % cand == 0:
            return cand
    return tm


def fused_mlp_flat(x, w1, b1, w2, b2, *, target_tm=256):
    """x: (B, L, Din) f32.  Returns relu(x@w1+b1)@w2+b2 with (B, L) flattened
    into the MXU M dimension.  Output shape (B, L, Dout), dtype = x.dtype.
    (Output could be emitted as bf16 if a bf16 decoder consumes it.)"""
    B, L, Din = x.shape
    H = w1.shape[1]
    Dout = w2.shape[1]
    M = B * L

    x2 = x.reshape(M, Din)                       # free view: (B, L) -> M rows
    tm = _pick_m_tile(M, target_tm)
    Mp = pl.cdiv(M, tm) * tm
    if Mp != M:
        x2 = jnp.pad(x2, ((0, Mp - M), (0, 0)))  # only when no divisor tile exists

    w1b = w1.astype(jnp.bfloat16)                # resident bf16 weights: halves VMEM + DMA
    w2b = w2.astype(jnp.bfloat16)
    b1r = b1.reshape(1, H).astype(jnp.float32)
    b2r = b2.reshape(1, Dout).astype(jnp.float32)

    # VMEM budget (real dims Din=768, H=512, Dout=1536, tm=256, f32 act / bf16 W):
    #   2*(tm*Din*4) + 2*(tm*Dout*4) + Din*H*2 + H*Dout*2 + small  ~= 7 MiB
    # -> fits the default scoped VMEM on v5e (16 MiB) and v6e/v7x (32 MiB).
    out = pl.pallas_call(
        _flat_mlp_kernel,
        out_shape=jax.ShapeDtypeStruct((Mp, Dout), x.dtype),
        grid_spec=pltpu.PrefetchScalarGridSpec(
            num_scalar_prefetch=0,
            grid=(Mp // tm,),
            in_specs=[
                pl.BlockSpec((tm, Din), lambda m: (m, 0)),
                pl.BlockSpec((Din, H), lambda m: (0, 0)),     # weights stay VMEM-resident
                pl.BlockSpec((1, H), lambda m: (0, 0)),
                pl.BlockSpec((H, Dout), lambda m: (0, 0)),
                pl.BlockSpec((1, Dout), lambda m: (0, 0)),
            ],
            out_specs=pl.BlockSpec((tm, Dout), lambda m: (m, 0)),
        ),
        compiler_params=pltpu.CompilerParams(
            dimension_semantics=("parallel",),
        ),
    )(x2, w1b, b1r, w2b, b2r)

    if Mp != M:
        out = out[:M]
    return out.reshape(B, L, Dout)


# ----------------------------------------------------------------------------
# Kernel B: combine + PositionalEncoding (fused concat replacement).
#   memory[b, t] = 2 * branch_embed(b, t) + pe[b]     (batch-major, no permute)
# ----------------------------------------------------------------------------
def combine_with_pe(fixed_y, num_y, var_y, pe_rows, *, target_tile_bytes=2 << 20):
    """fixed_y: (B, Lf, D), num_y: (B, D) or (B, 1, D), var_y: (B, Lv, D),
    pe_rows: (B, 1, D).  Returns batch-major memory (B, T, D) with
    out = y + pe + y (eval-mode PositionalEncoding) fused into the single write."""
    B, Lf, D = fixed_y.shape
    Lv = var_y.shape[1]
    T = Lf + 1 + Lv
    dtype = fixed_y.dtype

    num_y = num_y.reshape(B, 1, D).astype(dtype)
    pe_rows = pe_rows.reshape(B, 1, D).astype(dtype)   # cast pe to activation dtype

    slab = T * D * dtype.itemsize                       # bytes of one output batch row
    tb = max(1, min(B, target_tile_bytes // max(slab, 1)))
    if B >= 2:
        tb = min(tb, pl.cdiv(B, 2))                     # >= 2 grid steps (v7x megacore)
    while B % tb != 0:                                  # exact tiling, no partial blocks
        tb -= 1
    grid = (B // tb,)

    def kernel(fixed_ref, num_ref, var_ref, pe_ref, o_ref):
        # pe row is indexed by batch (module quirk) and broadcast over the T axis.
        pe = pe_ref[...]                                # (tb, 1, D)
        f = fixed_ref[...]                              # (tb, Lf, D)
        o_ref[:, 0:Lf, :] = f + pe + f                  # x + pe + dropout(x), eval
        n = num_ref[...]                                # (tb, 1, D)
        o_ref[:, Lf:Lf + 1, :] = n + pe + n
        v = var_ref[...]                                # (tb, Lv, D)
        o_ref[:, Lf + 1:T, :] = v + pe + v

    return pl.pallas_call(
        kernel,
        out_shape=jax.ShapeDtypeStruct((B, T, D), dtype),
        grid_spec=pltpu.PrefetchScalarGridSpec(
            num_scalar_prefetch=0,
            grid=grid,
            in_specs=[
                pl.BlockSpec((tb, Lf, D), lambda b: (b, 0, 0)),
                pl.BlockSpec((tb, 1, D), lambda b: (b, 0, 0)),
                pl.BlockSpec((tb, Lv, D), lambda b: (b, 0, 0)),
                pl.BlockSpec((tb, 1, D), lambda b: (b, 0, 0)),
            ],
            out_specs=pl.BlockSpec((tb, T, D), lambda b: (b, 0, 0)),
        ),
        compiler_params=pltpu.CompilerParams(
            dimension_semantics=("parallel",),
        ),
    )(fixed_y, num_y, var_y, pe_rows)


# ----------------------------------------------------------------------------
# Tiny pieces intentionally left to XLA (per performance review):
# ----------------------------------------------------------------------------
def two_numbers_mlp_xla(x, w1, b1, w2, b2):
    """(B, 2) -> (B, Dout).  Two M=1-ish rows of FLOPs per batch element: a
    pallas_call here is pure launch + weight-DMA overhead, so plain XLA."""
    h = jnp.maximum(x @ w1 + b1, 0.0)
    return h @ w2 + b2


def positional_encoding_eval(x, pe):
    """Eval-mode PositionalEncoding for the per-decode-step (1, B, D) input:
    x + pe[:x.shape[0]] + x.  Left to XLA (or future decoder-kernel fusion) —
    a dedicated pallas_call per token is dominated by launch/DMA overhead."""
    return x + pe[: x.shape[0]].astype(x.dtype) + x


# ----------------------------------------------------------------------------
# Deterministic sinusoidal PE table, shape (max_len, 1, d_model) like PyTorch.
# ----------------------------------------------------------------------------
def make_pe_table(d_model: int, max_len: int = 5000) -> jnp.ndarray:
    position = jnp.arange(max_len, dtype=jnp.float32)[:, None]
    div_term = jnp.exp(
        jnp.arange(0, d_model, 2, dtype=jnp.float32)
        * (-math.log(10000.0) / d_model)
    )
    pe = jnp.zeros((max_len, d_model), dtype=jnp.float32)
    pe = pe.at[:, 0::2].set(jnp.sin(position * div_term))
    pe = pe.at[:, 1::2].set(jnp.cos(position * div_term))
    return pe[:, None, :]


# ----------------------------------------------------------------------------
# Embedding-stage forward (everything before the decoder).
# ----------------------------------------------------------------------------
def v2m_embed_forward(fixed_tokens, two_numbers, variable_tokens, params, pe_table):
    (Wf1, bf1, Wf2, bf2), (Wn1, bn1, Wn2, bn2), (Wv1, bv1, Wv2, bv2) = params
    B = fixed_tokens.shape[0]

    fixed_y = fused_mlp_flat(fixed_tokens, Wf1, bf1, Wf2, bf2)       # (B, Lf, D)
    var_y = fused_mlp_flat(variable_tokens, Wv1, bv1, Wv2, bv2)      # (B, Lv, D)
    num_y = two_numbers_mlp_xla(two_numbers, Wn1, bn1, Wn2, bn2)     # (B, D)

    pe_rows = pe_table[:B]                                           # module quirk: pe[:batch_size]
    # Batch-major memory; permute(1,0,2) is intentionally NOT materialized.
    # TODO(synk): the (unimplemented) decoder should consume memory batch-major.
    memory_bt = combine_with_pe(fixed_y, num_y, var_y, pe_rows)      # (B, T, D)
    return memory_bt


if __name__ == "__main__":
    # Small shapes consistent with the module (real dims: 768 / 512 / 1536,
    # fixed_len=10, variable_len=20, batch=32), scaled down with lane-aligned D.
    B = 2
    fixed_len, var_len = 4, 8
    total_len = fixed_len + 1 + var_len                 # 13
    input_dim, hidden_dim, output_dim = 256, 128, 512
    max_len = 64                                        # module default is 5000

    f32 = jnp.float32
    key = jax.random.PRNGKey(0)
    ks = jax.random.split(key, 9)

    fixed_tokens = jax.random.normal(ks[0], (B, fixed_len, input_dim), f32)
    two_numbers = jax.random.normal(ks[1], (B, 2), f32)
    variable_tokens = jax.random.normal(ks[2], (B, var_len, input_dim), f32)

    def linear_params(k, din, dout):
        kw, kb = jax.random.split(k)
        w = jax.random.normal(kw, (din, dout), f32) * (1.0 / math.sqrt(din))
        b = jax.random.normal(kb, (dout,), f32) * 0.01
        return w, b

    Wf1, bf1 = linear_params(ks[3], input_dim, hidden_dim)
    Wf2, bf2 = linear_params(ks[4], hidden_dim, output_dim)
    Wn1, bn1 = linear_params(ks[5], 2, hidden_dim)
    Wn2, bn2 = linear_params(ks[6], hidden_dim, output_dim)
    Wv1, bv1 = linear_params(ks[7], input_dim, hidden_dim)
    Wv2, bv2 = linear_params(ks[8], hidden_dim, output_dim)

    pe = make_pe_table(output_dim, max_len=max_len)     # (max_len, 1, Dout)

    params = ((Wf1, bf1, Wf2, bf2), (Wn1, bn1, Wn2, bn2), (Wv1, bv1, Wv2, bv2))

    # ---- Pallas forward (embedding stage) ----
    memory_bt = v2m_embed_forward(fixed_tokens, two_numbers, variable_tokens, params, pe)
    memory_bt = jax.block_until_ready(memory_bt)

    # Per-decode-step PE on the (1, B, D) decoder input (left to XLA, see review).
    decoder_input = jnp.zeros((1, B, output_dim), f32)
    decoder_input_pe = jax.block_until_ready(positional_encoding_eval(decoder_input, pe))

    # ---- pure-JAX reference (eval mode: dropout == identity) ----
    def mlp_ref(x, w1, b1, w2, b2):
        return jnp.maximum(x @ w1 + b1, 0.0) @ w2 + b2

    fixed_ref = mlp_ref(fixed_tokens, Wf1, bf1, Wf2, bf2)
    number_ref = mlp_ref(two_numbers, Wn1, bn1, Wn2, bn2)[:, None, :]
    variable_ref = mlp_ref(variable_tokens, Wv1, bv1, Wv2, bv2)
    combined_ref = jnp.concatenate([fixed_ref, number_ref, variable_ref], axis=1)
    combined_ref = combined_ref + pe[:B] + combined_ref      # PositionalEncoding, eval mode
    dec_ref = decoder_input + pe[:1] + decoder_input

    assert memory_bt.shape == (B, total_len, output_dim)
    assert decoder_input_pe.shape == (1, B, output_dim)

    # bf16 MXU operands / f32 accumulation vs XLA f32 reference -> relative-norm check.
    rel_err = float(
        jnp.linalg.norm(memory_bt - combined_ref)
        / (jnp.linalg.norm(combined_ref) + 1e-12)
    )
    assert rel_err < 2e-2, f"fused MLP + combine/PE mismatch: rel_err={rel_err}"
    assert jnp.allclose(decoder_input_pe, dec_ref, atol=1e-6, rtol=1e-6)

    print("KERNEL_OK")
</pallas_src>

<mosaic_0001>
module attributes {stable_mosaic.version = 11 : i64} {
  func.func @_flat_mlp_kernel(%arg0: i32, %arg1: memref<8x256xf32, #tpu.memory_space<vmem>>, %arg2: memref<256x128xbf16, #tpu.memory_space<vmem>>, %arg3: memref<1x128xf32, #tpu.memory_space<vmem>>, %arg4: memref<128x512xbf16, #tpu.memory_space<vmem>>, %arg5: memref<1x512xf32, #tpu.memory_space<vmem>>, %arg6: memref<8x512xf32, #tpu.memory_space<vmem>>) attributes {dimension_semantics = [#tpu.dimension_semantics<parallel>], iteration_bounds = array<i64: 1>, scalar_prefetch = 0 : i64, scratch_operands = 0 : i64, tpu.core_type = #tpu.core_type<tc>, window_params = [{transform_indices = @transform_0, window_bounds = array<i64: 8, 256>}, {pipeline_mode = #tpu.pipeline_mode<synchronous>, transform_indices = @transform_1, window_bounds = array<i64: 256, 128>}, {pipeline_mode = #tpu.pipeline_mode<synchronous>, transform_indices = @transform_2, window_bounds = array<i64: 1, 128>}, {pipeline_mode = #tpu.pipeline_mode<synchronous>, transform_indices = @transform_3, window_bounds = array<i64: 128, 512>}, {pipeline_mode = #tpu.pipeline_mode<synchronous>, transform_indices = @transform_4, window_bounds = array<i64: 1, 512>}, {transform_indices = @transform_5, window_bounds = array<i64: 8, 512>}]} {
    %c0 = arith.constant 0 : index
    %c0_0 = arith.constant 0 : index
    %0 = vector.load %arg1[%c0, %c0_0] : memref<8x256xf32, #tpu.memory_space<vmem>>, vector<8x256xf32>
    %1 = arith.truncf %0 : vector<8x256xf32> to vector<8x256xbf16>
    %c0_1 = arith.constant 0 : index
    %c0_2 = arith.constant 0 : index
    %2 = vector.load %arg2[%c0_1, %c0_2] : memref<256x128xbf16, #tpu.memory_space<vmem>>, vector<256x128xbf16>
    %cst = arith.constant dense<0.000000e+00> : vector<8x128xf32>
    %3 = tpu.matmul %1, %2, %cst {dimension_numbers = #tpu.dot_dimension_numbers<[1], [0], [0], [1], [0, 0, 1, 1], [], []>} : vector<8x256xbf16>, vector<256x128xbf16>, vector<8x128xf32> -> vector<8x128xf32>
    %c0_3 = arith.constant 0 : index
    %c0_4 = arith.constant 0 : index
    %4 = vector.load %arg3[%c0_3, %c0_4] : memref<1x128xf32, #tpu.memory_space<vmem>>, vector<1x128xf32>
    %5 = vector.broadcast %4 : vector<1x128xf32> to vector<8x128xf32>
    %6 = arith.addf %3, %5 : vector<8x128xf32>
    %cst_5 = arith.constant 0.000000e+00 : f32
    %7 = vector.broadcast %cst_5 : f32 to vector<8x128xf32>
    %8 = arith.maximumf %6, %7 : vector<8x128xf32>
    %9 = arith.truncf %8 : vector<8x128xf32> to vector<8x128xbf16>
    %c0_6 = arith.constant 0 : index
    %c0_7 = arith.constant 0 : index
    %10 = vector.load %arg4[%c0_6, %c0_7] : memref<128x512xbf16, #tpu.memory_space<vmem>>, vector<128x512xbf16>
    %cst_8 = arith.constant dense<0.000000e+00> : vector<8x512xf32>
    %11 = tpu.matmul %9, %10, %cst_8 {dimension_numbers = #tpu.dot_dimension_numbers<[1], [0], [0], [1], [0, 0, 1, 1], [], []>} : vector<8x128xbf16>, vector<128x512xbf16>, vector<8x512xf32> -> vector<8x512xf32>
    %c0_9 = arith.constant 0 : index
    %c0_10 = arith.constant 0 : index
    %12 = vector.load %arg5[%c0_9, %c0_10] : memref<1x512xf32, #tpu.memory_space<vmem>>, vector<1x512xf32>
    %13 = vector.broadcast %12 : vector<1x512xf32> to vector<8x512xf32>
    %14 = arith.addf %11, %13 : vector<8x512xf32>
    %c0_11 = arith.constant 0 : index
    %c0_12 = arith.constant 0 : index
    %15 = vector.load %arg6[%c0_11, %c0_12] : memref<8x512xf32, #tpu.memory_space<vmem>>, vector<8x512xf32>
    tpu.vector_store %arg6[%c0_11, %c0_12], %14 {strides = array<i32>} : memref<8x512xf32, #tpu.memory_space<vmem>>, vector<8x512xf32>,
    return
  }
  func.func @transform_0(%arg0: i32) -> (i32, i32) {
    %c0_i32 = arith.constant 0 : i32
    %c0_i32_0 = arith.constant 0 : i32
    return %arg0, %c0_i32 : i32, i32
  }
  func.func @transform_1(%arg0: i32) -> (i32, i32) {
    %c0_i32 = arith.constant 0 : i32
    %c0_i32_0 = arith.constant 0 : i32
    %c0_i32_1 = arith.constant 0 : i32
    return %c0_i32, %c0_i32_0 : i32, i32
  }
  func.func @transform_2(%arg0: i32) -> (i32, i32) {
    %c0_i32 = arith.constant 0 : i32
    %c0_i32_0 = arith.constant 0 : i32
    %c0_i32_1 = arith.constant 0 : i32
    return %c0_i32, %c0_i32_0 : i32, i32
  }
  func.func @transform_3(%arg0: i32) -> (i32, i32) {
    %c0_i32 = arith.constant 0 : i32
    %c0_i32_0 = arith.constant 0 : i32
    %c0_i32_1 = arith.constant 0 : i32
    return %c0_i32, %c0_i32_0 : i32, i32
  }
  func.func @transform_4(%arg0: i32) -> (i32, i32) {
    %c0_i32 = arith.constant 0 : i32
    %c0_i32_0 = arith.constant 0 : i32
    %c0_i32_1 = arith.constant 0 : i32
    return %c0_i32, %c0_i32_0 : i32, i32
  }
  func.func @transform_5(%arg0: i32) -> (i32, i32) {
    %c0_i32 = arith.constant 0 : i32
    %c0_i32_0 = arith.constant 0 : i32
    return %arg0, %c0_i32 : i32, i32
  }
}

</mosaic_0001>

<bundles_post_ra>
// kernel: tpu_custom_call.1
= control target key start
LH: loop header
LB: loop body
LE: loop exit
PB: predicated region body
PF: predicated region fallthrough
CT: control target
= control target key end

     0   :  { %10 = vsyncpa [#allocation3], 0  ;;  %s845_s0 = inlined_call_operand.hbm [shape: f32[8,256], index: 0, kind: input, shape index: {}]   ;;  %s846_s1 = inlined_call_operand.hbm [shape: bf16[256,128], index: 1, kind: input, shape index: {}]   ;;  %s847_s2 = inlined_call_operand.vmem [shape: f32[1,128], index: 2, kind: input, shape index: {}]   ;;  %s848_s3 = inlined_call_operand.hbm [shape: bf16[128,512], index: 3, kind: input, shape index: {}]   ;;  %s849_s4 = inlined_call_operand.vmem [shape: f32[1,512], index: 4, kind: input, shape index: {}]   ;;  %s850_s5 = inlined_call_operand.hbm [shape: f32[8,512], index: 5, kind: output, shape index: {}]  }
   0x1   :  { %11 = vsyncpa [#allocation6], 0 }
   0x2   :  { %12 = vsyncpa [#allocation4], 0  ;;  %s788_s18 = smov [#allocation5]  }
   0x3   :  { %s28_s19 = sshll.u32 %s788_s18, 4  ;;  %s29_s19 = int_to_ptr.vmem [resolvable:$true] %s28_s19 }
   0x4   :  { %s710_s20 = scalar_lea.vmem %s29_s19, 2048  ;;  %p715_p1 = scmp.lt.s32.totalorder %s29_s19, %s29_s19 }
   0x5   :  { %p711_p0 = scmp.ne.s32.totalorder %s29_s19, %s710_s20  ;;  %p716_p2 = scmp.lt.s32.totalorder %s710_s20, %s710_s20 }
   0x7   :  { %p717_p3 = por %p716_p2, %p715_p1 }
   0x9   :  { %p718_p4 = pnand %p717_p3, %p711_p0 }
   0xb   :  { %721 = shalt.err (!%p718_p4)
}
   0xc   :  { %s789_s21 = smov 64   ;;  %s790_s22 = smov 4  }
   0xd   :  { %34 = dma.hbm_to_vmem [thread:$0]  %s846_s1, 2048, %s29_s19, [#allocation6], %s789_s21, %s789_s21, %s790_s22  }
   0xe   :  { %s791_s25 = smov [#allocation2]   ;;  %s792_s27 = smov [#allocation7]  }
   0xf   :  { %s19_s26 = sshll.u32 %s791_s25, 4  ;;  %s42_s28 = sshll.u32 %s792_s27, 4  ;;  %s20_s26 = int_to_ptr.vmem [resolvable:$true] %s19_s26  ;;  %s43_s28 = int_to_ptr.vmem [resolvable:$true] %s42_s28 }
  0x10   :  { %s730_s29 = scalar_lea.vmem %s20_s26, 256  ;;  %p735_p6 = scmp.lt.s32.totalorder %s20_s26, %s20_s26 }
  0x11   :  { %p731_p5 = scmp.ne.s32.totalorder %s20_s26, %s730_s29  ;;  %p736_p7 = scmp.lt.s32.totalorder %s730_s29, %s730_s29 }
  0x13   :  { %p737_p8 = por %p736_p7, %p735_p6 }
  0x15   :  { %p738_p9 = pnand %p737_p8, %p731_p5 }
  0x17   :  { %741 = shalt.err (!%p738_p9)
}
  0x18   :  { %22 = dma.hbm_to_vmem [thread:$0]  %s845_s0, 256, %s20_s26, [#allocation3]  }
  0x19   :  { %s750_s7 = scalar_lea.vmem %s43_s28, 4096  ;;  %p755_p11 = scmp.lt.s32.totalorder %s43_s28, %s43_s28 }
  0x1a   :  { %p751_p10 = scmp.ne.s32.totalorder %s43_s28, %s750_s7  ;;  %p756_p12 = scmp.lt.s32.totalorder %s750_s7, %s750_s7 }
  0x1c   :  { %p757_p13 = por %p756_p12, %p755_p11 }
  0x1e   :  { %p758_p0 = pnand %p757_p13, %p751_p10 }
  0x20   :  { %761 = shalt.err (!%p758_p0)
}
  0x21   :  { %s793_s1 = smov 256   ;;  %s794_s8 = smov 16  }
  0x22   :  { %48 = dma.hbm_to_vmem [thread:$0]  %s848_s3, 4096, %s43_s28, [#allocation6], %s793_s1, %s793_s1, %s794_s8  }
  0x23   :  { %782 = dma.done.wait [#allocation3], 256  }
  0x24   :  { %783 = vsyncadd [#allocation3], 4294967040 }
  0x25   :  { %784 = dma.done.wait [#allocation6], 6144  }
  0x26   :  { %785 = vsyncadd [#allocation6], 4294961152  ;;  %v638_v0 = vld [vmem:[#allocation5 + $0x78] sm:$0xff]   ;;  %v640_v2 = vld [vmem:[#allocation5 + $0x70] sm:$0xff]   ;;  %v795_v52 = vmov 0   ;;  %v276_v62 = vlaneseq }
  0x27   :  { %v639_v1 = vld [vmem:[#allocation5 + $0x38] sm:$0xff]   ;;  %607 = vmatprep.subr.bf16.mxu0 %v638_v0  ;;  %v641_v3 = vld [vmem:[#allocation5 + $0x30] sm:$0xff]   ;;  %v642_v4 = vld [vmem:[#allocation5 + $0x68] sm:$0xff]   ;;  %488 = vmatprep.mubr.bf16.mxu1 %v795_v52 }
  0x28   :  { %608 = vmatpush3.bf16.msra.mxu0 %v639_v1  ;;  %v643_v5 = vld [vmem:[#allocation5 + $0x28] sm:$0xff]   ;;  %v644_v6 = vld [vmem:[#allocation5 + $0x60] sm:$0xff]   ;;  %v646_v8 = vld [vmem:[#allocation5 + $0x58] sm:$0xff]   ;;  %v277_v63 = vshrl.u32 %v276_v62, 7 }
  0x29   :  { %609 = vmatprep.subr.bf16.mxu0 %v640_v2  ;;  %v645_v7 = vld [vmem:[#allocation5 + $0x20] sm:$0xff]   ;;  %v647_v9 = vld [vmem:[#allocation5 + $0x18] sm:$0xff]   ;;  %v648_v10 = vld [vmem:[#allocation5 + $0x50] sm:$0xff]  }
  0x2a   :  { %v62_v11 = vld [vmem:[#allocation2 + $0x8] sm:$0xff]  ;;  %v654_v13 = vld [vmem:[#allocation7 + $0xe4] ss:$16 sps:$4 sm:$0xff]   ;;  %v650_v15 = vld [vmem:[#allocation5 + $0x48] sm:$0xff]   ;;  %v278_v0 = vsub.s32 0, %v277_v63  ;;  %v286_v1 = vsub.s32 2, %v277_v63 }
  0x2b   :  { %v64_v12 = vpack.c.bf16 %v62_v11, %v62_v11  ;;  %v649_v14 = vld [vmem:[#allocation5 + $0x10] sm:$0xff]   ;;  %456 = vmatprep.subr.bf16.mxu1 %v654_v13  ;;  %v651_v20 = vld [vmem:[#allocation5 + $0x8] sm:$0xff]   ;;  %v652_v21 = vld [vmem:[#allocation5 + $0x40] sm:$0xff]  }
  0x2c   :  { %610 = vmatpush3.bf16.msra.mxu0 %v641_v3  ;;  %v659_v16 = vld [vmem:[#allocation7 + $0xe0] ss:$16 sps:$4 sm:$0xff]   ;;  %v660_v17 = vld [vmem:[#allocation7 + $0xc4] ss:$16 sps:$4 sm:$0xff]   ;;  %v658_v26 = vld [vmem:[#allocation7 + $0xec] ss:$16 sps:$4 sm:$0xff]  }
  0x2d   :  { %611 = vmatprep.subr.bf16.mxu0 %v642_v4  ;;  %232 = vmatprep.mubr.bf16.mxu0 %v64_v12  ;;  %v665_v18 = vld [vmem:[#allocation7 + $0xc0] ss:$16 sps:$4 sm:$0xff]   ;;  %v666_v19 = vld [vmem:[#allocation7 + $0xa4] ss:$16 sps:$4 sm:$0xff]   ;;  %v656_v27 = vld [vmem:[#allocation7 + $0xe8] ss:$16 sps:$4 sm:$0xff]  }
  0x2e   :  { %457 = vmatpush1.bf16.msra.mxu1 %v659_v16  ;;  %v671_v22 = vld [vmem:[#allocation7 + $0xa0] ss:$16 sps:$4 sm:$0xff]   ;;  %v672_v24 = vld [vmem:[#allocation7 + $0x84] ss:$16 sps:$4 sm:$0xff]   ;;  %v664_v30 = vld [vmem:[#allocation7 + $0xcc] ss:$16 sps:$4 sm:$0xff]  }
  0x2f   :  { %458 = vmatprep.subr.bf16.mxu1 %v660_v17  ;;  %v653_v23 = vld [vmem:[#allocation5] sm:$0xff]   ;;  %v61_v25 = vld [vmem:[#allocation2] sm:$0xff]  ;;  %v662_v34 = vld [vmem:[#allocation7 + $0xc8] ss:$16 sps:$4 sm:$0xff]   ;;  %v282_v3 = vsub.s32 1, %v277_v63  ;;  %v290_v4 = vsub.s32 3, %v277_v63 }
  0x30   :  { %612 = vmatpush3.bf16.msra.mxu0 %v643_v5  ;;  %v677_v28 = vld [vmem:[#allocation7 + $0x80] ss:$16 sps:$4 sm:$0xff]   ;;  %v63_v29 = vpack.c.bf16 %v61_v25, %v61_v25  ;;  %v678_v31 = vld [vmem:[#allocation7 + $0x64] ss:$16 sps:$4 sm:$0xff]   ;;  %v670_v35 = vld [vmem:[#allocation7 + $0xac] ss:$16 sps:$4 sm:$0xff]  }
  0x31   :  { %613 = vmatprep.subr.bf16.mxu0 %v644_v6  ;;  %v683_v32 = vld [vmem:[#allocation7 + $0x60] ss:$16 sps:$4 sm:$0xff]   ;;  %v684_v33 = vld [vmem:[#allocation7 + $0x44] ss:$16 sps:$4 sm:$0xff]   ;;  %v668_v36 = vld [vmem:[#allocation7 + $0xa8] ss:$16 sps:$4 sm:$0xff]  }
  0x32   :  { %459 = vmatpush1.bf16.msra.mxu1 %v665_v18  ;;  %v676_v37 = vld [vmem:[#allocation7 + $0x8c] ss:$16 sps:$4 sm:$0xff]   ;;  %v674_v38 = vld [vmem:[#allocation7 + $0x88] ss:$16 sps:$4 sm:$0xff]   ;;  %v689_v43 = vld [vmem:[#allocation7 + $0x40] ss:$16 sps:$4 sm:$0xff]  }
  0x33   :  { %460 = vmatprep.subr.bf16.mxu1 %v666_v19  ;;  %v682_v39 = vld [vmem:[#allocation7 + $0x6c] ss:$16 sps:$4 sm:$0xff]   ;;  %v680_v40 = vld [vmem:[#allocation7 + $0x68] ss:$16 sps:$4 sm:$0xff]   ;;  %v690_v44 = vld [vmem:[#allocation7 + $0x24] ss:$16 sps:$4 sm:$0xff]  }
  0x34   :  { %614 = vmatpush3.bf16.msra.mxu0 %v645_v7  ;;  %v688_v41 = vld [vmem:[#allocation7 + $0x4c] ss:$16 sps:$4 sm:$0xff]   ;;  %v686_v42 = vld [vmem:[#allocation7 + $0x48] ss:$16 sps:$4 sm:$0xff]   ;;  %v695_v47 = vld [vmem:[#allocation7 + $0x20] ss:$16 sps:$4 sm:$0xff]  }
  0x35   :  { %615 = vmatprep.subr.bf16.mxu0 %v646_v8  ;;  %v694_v45 = vld [vmem:[#allocation7 + $0x2c] ss:$16 sps:$4 sm:$0xff]   ;;  %v692_v46 = vld [vmem:[#allocation7 + $0x28] ss:$16 sps:$4 sm:$0xff]   ;;  %v696_v48 = vld [vmem:[#allocation7 + $0x4] ss:$16 sps:$4 sm:$0xff]  }
  0x36   :  { %461 = vmatpush1.bf16.msra.mxu1 %v671_v22  ;;  %v700_v49 = vld [vmem:[#allocation7 + $0xc] ss:$16 sps:$4 sm:$0xff]   ;;  %v698_v50 = vld [vmem:[#allocation7 + $0x8] ss:$16 sps:$4 sm:$0xff]   ;;  %v701_v51 = vld [vmem:[#allocation7] ss:$16 sps:$4 sm:$0xff]  }
  0x37   :  { %462 = vmatprep.subr.bf16.mxu1 %v672_v24  ;;  %v558_v54 = vld [vmem:[%s847_s2] ss:$0 sm:$0xff]  ;;  %s796_s2 = smov [#allocation8]  }
  0x38   :  { %616 = vmatpush3.bf16.msra.mxu0 %v647_v9  ;;  %v274_v2 = vld [vmem:[%s849_s4] sm:$0xf]  ;;  %s548_s13 = sshll.u32 %s796_s2, 4  ;;  %s549_s13 = int_to_ptr.vmem [resolvable:$true] %s548_s13 }
  0x39   :  { %617 = vmatprep.subr.bf16.mxu0 %v648_v10  ;;  %v279_v5 = vrot.slane %v274_v2, %v278_v0  ;;  %v287_v6 = vrot.slane %v274_v2, %v286_v1  ;;  %v283_v7 = vrot.slane %v274_v2, %v282_v3  ;;  %v291_v8 = vrot.slane %v274_v2, %v290_v4  ;;  %s762_s4 = scalar_lea.vmem %s549_s13, 512  ;;  %p767_p2 = scmp.lt.s32.totalorder %s549_s13, %s549_s13 }
  0x3a   :  { %463 = vmatpush1.bf16.msra.mxu1 %v677_v28  ;;  %p763_p1 = scmp.ne.s32.totalorder %s549_s13, %s762_s4  ;;  %p768_p3 = scmp.lt.s32.totalorder %s762_s4, %s762_s4 }
  0x3b   :  { %464 = vmatprep.subr.bf16.mxu1 %v678_v31 }
  0x3c   :  { %618 = vmatpush3.bf16.msra.mxu0 %v649_v14  ;;  %p769_p4 = por %p768_p3, %p767_p2 }
  0x3d   :  { %619 = vmatprep.subr.bf16.mxu0 %v650_v15 }
  0x3e   :  { %465 = vmatpush1.bf16.msra.mxu1 %v683_v32  ;;  %p770_p5 = pnand %p769_p4, %p763_p1 }
  0x3f   :  { %466 = vmatprep.subr.bf16.mxu1 %v684_v33 }
  0x40   :  { %620 = vmatpush3.bf16.msra.mxu0 %v651_v20 }
  0x41   :  { %621 = vmatprep.subr.bf16.mxu0 %v652_v21 }
  0x42   :  { %467 = vmatpush1.bf16.msra.mxu1 %v689_v43 }
  0x43   :  { %468 = vmatprep.subr.bf16.mxu1 %v690_v44 }
  0x44   :  { %622 = vmatpush3.bf16.msra.mxu0 %v653_v23 }
  0x45   :  { %497 = vmatprep.subr.bf16.mxu0 %v658_v26 }
  0x46   :  { %469 = vmatpush1.bf16.msra.mxu1 %v695_v47 }
  0x47   :  { %233 = vmatmul.mubr.bf16.vlgmr.msra.gmra.mxu0 %v63_v29  ;;  %470 = vmatprep.subr.bf16.mxu1 %v696_v48 }
  0x48   :  { %498 = vmatpush1.bf16.msra.mxu0 %v656_v27  ;;  %529 = vmatprep.mubr.bf16.mxu0 %v795_v52 }
  0x49   :  { %499 = vmatprep.subr.bf16.mxu0 %v664_v30 }
  0x4a   :  { %471 = vmatpush1.bf16.msra.mxu1 %v701_v51 }
  0x4c   :  { %500 = vmatpush1.bf16.msra.mxu0 %v662_v34 }
  0x4d   :  { %501 = vmatprep.subr.bf16.mxu0 %v670_v35 }
  0x50   :  { %502 = vmatpush1.bf16.msra.mxu0 %v668_v36 }
  0x51   :  { %503 = vmatprep.subr.bf16.mxu0 %v676_v37 }
  0x54   :  { %504 = vmatpush1.bf16.msra.mxu0 %v674_v38 }
  0x55   :  { %505 = vmatprep.subr.bf16.mxu0 %v682_v39 }
  0x58   :  { %506 = vmatpush1.bf16.msra.mxu0 %v680_v40 }
  0x59   :  { %507 = vmatprep.subr.bf16.mxu0 %v688_v41 }
  0x5c   :  { %508 = vmatpush1.bf16.msra.mxu0 %v686_v42 }
  0x5d   :  { %509 = vmatprep.subr.bf16.mxu0 %v694_v45 }
  0x60   :  { %510 = vmatpush1.bf16.msra.mxu0 %v692_v46 }
  0x61   :  { %511 = vmatprep.subr.bf16.mxu0 %v700_v49 }
  0x64   :  { %512 = vmatpush1.bf16.msra.mxu0 %v698_v50 }
 0x107   :  { %v623_v53 = vpop.f32.mrf.mxu0 }
 0x109   :  { %v624_v55 = vpop.f32.mrf.mxu0 }
 0x10a   :  { %v625_v56 = vadd.f32 %v624_v55, %v623_v53 }
 0x10b   :  { %v626_v57 = vpop.f32.mrf.mxu0 }
 0x10c   :  { %v235_v58 = vadd.f32 %v625_v56, %v558_v54 }
 0x10d   :  { %v627_v59 = vpop.f32.mrf.mxu0 }
 0x10e   :  { %v240_v60 = vmax.f32 %v235_v58, 0.0 }
 0x110   :  { %v241_v61 = vpack.c.bf16 %v240_v60, %v240_v60 }
 0x112   :  { %489 = vmatmul.mubr.bf16.vlgmr.msra.gmra.mxu1 %v241_v61  ;;  %530 = vmatmul.mubr.bf16.vlgmr.msra.gmra.mxu0 %v241_v61 }
 0x1d2   :  { %v490_v9 = vpop.f32.mrf.mxu1  ;;  %v531_v10 = vpop.f32.mrf.mxu0 }
 0x1d3   :  { %v491_v11 = vadd.f32 %v490_v9, %v279_v5  ;;  %v532_v12 = vadd.f32 %v531_v10, %v287_v6 }
 0x1d4   :  { %v492_v13 = vpop.f32.mrf.mxu1  ;;  %v533_v14 = vpop.f32.mrf.mxu0 }
 0x1d5   :  { %538 = vst [vmem:[#allocation8] sm:$0xff] %v491_v11  ;;  %540 = vst [vmem:[#allocation8 + $0x10] sm:$0xff] %v532_v12  ;;  %v493_v15 = vadd.f32 %v492_v13, %v283_v7  ;;  %v534_v16 = vadd.f32 %v533_v14, %v291_v8 }
 0x1d6   :  { %v494_v17 = vpop.f32.mrf.mxu1  ;;  %v535_v18 = vpop.f32.mrf.mxu0 }
 0x1d7   :  { %539 = vst [vmem:[#allocation8 + $0x8] sm:$0xff] %v493_v15  ;;  %541 = vst [vmem:[#allocation8 + $0x18] sm:$0xff] %v534_v16 }
 0x1d8   :  { %v495_v19 = vpop.f32.mrf.mxu1  ;;  %v536_v20 = vpop.f32.mrf.mxu0 }
 0x1d9   :  { %773 = shalt.err (!%p770_p5)
}
 0x1da   :  { %551 = dma.vmem_to_hbm [thread:$0]  %s549_s13, 512, %s850_s5, [#allocation4]  }
 0x1db   :  { %786 = dma.done.wait [#allocation4], 512  }
 0x1dc   :  { %787 = vsyncadd [#allocation4], 4294966784 }
 0x1dd   :  { %555 = vsyncpa [#allocation3], 1 }
 0x1de   :  { %556 = vsyncpa [#allocation6], 1 }
 0x1df   :  { %557 = vsyncpa [#allocation4], 1 }

</bundles_post_ra>
